<compile_context>
chip_gen: v5e
topology: v5e:2x2
jax: 0.10.0
libtpu: 0.0.40
codegen_flags: <defaults>
</compile_context>

<pallas_src>
import functools

import jax
import jax.numpy as jnp
from jax.experimental import pallas as pl
from jax.experimental.pallas import tpu as pltpu


def _masked_taps(x2, masks, width):
    """9 shifted+masked copies of x2 for the 3x3 stencil (tap order ky*3+kx).

    x2:    (C, HWp) f32, flattened row-major spatial axis last (lane axis).
    masks: (9, HWp) f32 row/col/pad validity per tap.
    Shifts are pltpu.roll (XLU) — no zero-fill concatenates; any circular wrap
    only reaches positions the masks zero out.
    """
    hwp = x2.shape[-1]
    taps = []
    k = 0
    for dy in (-1, 0, 1):
        for dx in (-1, 0, 1):
            s = dy * width + dx                      # flat offset of the tap
            if dy == 0 and dx == 0:
                t = x2                               # center tap: always valid
            else:
                t = x2 if s == 0 else pltpu.roll(x2, shift=(-s) % hwp, axis=1)
                t = t * masks[k:k + 1]               # (1, HWp) broadcast
            taps.append(t)
            k += 1
    return taps


def _sepconv_kernel(x_ref, masks_ref, dw_ref, db_ref, pw_ref, pb_ref, o_ref,
                    *, width, mxu_dtype=None):
    # x_ref:     (BB, C, HWp)  lane-dense input block
    # masks_ref: (9, HWp)      per-tap validity masks (constant index_map)
    # dw_ref:    (C, 9)        depthwise 3x3 weights, taps flattened ky*3+kx
    # db_ref:    (C, 1)        depthwise bias
    # pw_ref:    (Co, C)       pointwise 1x1 weights
    # pb_ref:    (Co, 1)       pointwise bias
    # o_ref:     (BB, Co, HWp) lane-dense output block
    BB = x_ref.shape[0]

    masks = masks_ref[...]
    dwv = dw_ref[...].astype(jnp.float32)
    db = db_ref[...].astype(jnp.float32)
    pw = pw_ref[...].astype(jnp.float32)
    pb = pb_ref[...].astype(jnp.float32)

    # Hoisted per-tap weight columns (JAX does not CSE broadcasts).
    w_taps = [dwv[:, k:k + 1] for k in range(9)]             # 9 x (C, 1)
    lhs = pw if mxu_dtype is None else pw.astype(mxu_dtype)

    for b in range(BB):
        xb = x_ref[b].astype(jnp.float32)                    # (C, HWp)
        taps = _masked_taps(xb, masks, width)
        # Three independent partial accumulators (one per stencil row) -> ILP.
        rows = []
        for r in range(3):
            a = taps[3 * r] * w_taps[3 * r]
            a = a + taps[3 * r + 1] * w_taps[3 * r + 1]
            a = a + taps[3 * r + 2] * w_taps[3 * r + 2]
            rows.append(a)
        acc = (rows[0] + rows[1]) + (rows[2] + db)           # depthwise + bias
        rhs = acc if mxu_dtype is None else acc.astype(mxu_dtype)
        out_b = jnp.dot(lhs, rhs, preferred_element_type=jnp.float32) + pb
        o_ref[b] = out_b.astype(o_ref.dtype)                 # full-lane store


def _sepconv_kernel_factorized(x_ref, masks_ref, weff_ref, beff_ref, o_ref,
                               *, width, mxu_dtype=None):
    # Depthwise weights folded into the pointwise matmul:
    #   weff_ref: (Co, 9*C), weff[o, k*C + c] = pw[o, c] * dw[c, k]
    #   beff_ref: (Co, 1),   beff = pw @ db + pb
    BB = x_ref.shape[0]
    masks = masks_ref[...]
    weff = weff_ref[...].astype(jnp.float32)
    beff = beff_ref[...].astype(jnp.float32)
    lhs = weff if mxu_dtype is None else weff.astype(mxu_dtype)

    for b in range(BB):
        xb = x_ref[b].astype(jnp.float32)                    # (C, HWp)
        taps = _masked_taps(xb, masks, width)
        rhs = jnp.concatenate(taps, axis=0)                  # (9C, HWp)
        if mxu_dtype is not None:
            rhs = rhs.astype(mxu_dtype)
        out_b = jnp.dot(lhs, rhs, preferred_element_type=jnp.float32) + beff
        o_ref[b] = out_b.astype(o_ref.dtype)


def _plan(B, C, Co, HWp, itemsize, factorized, batch_block):
    """Pick the batch block (BB) and a scoped-VMEM limit, generation-aware."""
    try:
        cap = int(pltpu.get_tpu_info().vmem_capacity_bytes)
    except Exception:
        cap = 64 * 1024 * 1024            # conservative fallback (v7x per-TC)

    # Double-buffered in/out blocks scale with BB; the in-kernel f32
    # intermediates are per batch element (the kernel loops over the block),
    # so they are a fixed overhead, as are the masks/weights.
    per_b = 2 * (C + Co) * HWp * itemsize
    inter_ch = (20 * C + 2 * Co) if factorized else (12 * C + 2 * Co)
    fixed = 4 * HWp * inter_ch + 4 * (9 * HWp + 16 * C * Co + 2 * (C + Co))
    budget = int(cap * 0.45)

    if batch_block is not None:
        if B % batch_block != 0:
            raise ValueError("batch_block must divide the batch size")
        bb = batch_block
    else:
        # BB <= 32 keeps the unrolled per-batch dot/store loop small.
        cands = [d for d in range(1, min(B, 32) + 1) if B % d == 0]
        fits = [d for d in cands if d * per_b + fixed <= budget] or [1]
        even = [d for d in fits if (B // d) >= 2 and (B // d) % 2 == 0]
        multi = [d for d in fits if (B // d) >= 2]
        bb = max(even or multi or fits)   # even #steps >= 2 first (2-TC parts)

    step_bytes = bb * per_b + fixed
    vmem_limit = int(min(cap * 3 // 4, max(32 * 1024 * 1024, 2 * step_bytes)))
    return bb, vmem_limit


def separable_conv2d(x, dw, db, pw, pb, *, batch_block=None, mxu_dtype=None,
                     factorized=None):
    """Depthwise 3x3 (stride 1, pad 1) + pointwise 1x1, both with bias.

    x: (B, C, H, W); dw: (C, 3, 3); db: (C,); pw: (Co, C); pb: (Co,).
    Returns (B, Co, H, W) — same semantics as the PyTorch SeparableConv2d.
    """
    B, C, H, W = x.shape
    Co = pw.shape[0]
    assert dw.shape == (C, 3, 3) and db.shape == (C,)
    assert pw.shape == (Co, C) and pb.shape == (Co,)

    HW = H * W
    HWp = ((HW + 127) // 128) * 128       # lane-dense flattened spatial axis
    if factorized is None:
        factorized = C >= 16              # tiny C: keep the taps on the VPU

    bb, vmem_limit = _plan(B, C, Co, HWp, jnp.dtype(x.dtype).itemsize,
                           factorized, batch_block)
    grid = (B // bb,)

    # Flatten spatial dims (metadata-only); pad the lane axis if H*W is not a
    # multiple of 128 so every load/store is an unmasked full-lane access.
    x_flat = x.reshape(B, C, HW)
    if HWp != HW:
        x_flat = jnp.pad(x_flat, ((0, 0), (0, 0), (0, HWp - HW)))

    # Per-tap validity masks (row + column + pad), built once, VMEM-resident.
    pos = jnp.arange(HWp)
    row, col = pos // W, pos % W
    mask_rows = []
    for dy in (-1, 0, 1):
        for dx in (-1, 0, 1):
            ok = pos < HW
            if dy == -1:
                ok = ok & (row > 0)
            elif dy == 1:
                ok = ok & (row < H - 1)
            if dx == -1:
                ok = ok & (col > 0)
            elif dx == 1:
                ok = ok & (col < W - 1)
            mask_rows.append(ok)
    masks = jnp.stack(mask_rows).astype(jnp.float32)          # (9, HWp)

    x_spec = pl.BlockSpec((bb, C, HWp), lambda i: (i, 0, 0))
    m_spec = pl.BlockSpec((9, HWp), lambda i: (0, 0))
    o_spec = pl.BlockSpec((bb, Co, HWp), lambda i: (i, 0, 0))
    common = dict(
        out_shape=jax.ShapeDtypeStruct((B, Co, HWp), x.dtype),
        compiler_params=pltpu.CompilerParams(
            dimension_semantics=("parallel",),
            vmem_limit_bytes=vmem_limit),
    )

    if factorized:
        dw9 = dw.reshape(C, 9)
        weff = (pw[:, None, :] * dw9.T[None, :, :]).reshape(Co, 9 * C)
        beff = (pw @ db + pb).reshape(Co, 1)
        kernel = functools.partial(_sepconv_kernel_factorized, width=W,
                                   mxu_dtype=mxu_dtype)
        out = pl.pallas_call(
            kernel,
            grid_spec=pltpu.PrefetchScalarGridSpec(
                num_scalar_prefetch=0, grid=grid,
                in_specs=[x_spec, m_spec,
                          pl.BlockSpec((Co, 9 * C), lambda i: (0, 0)),
                          pl.BlockSpec((Co, 1), lambda i: (0, 0))],
                out_specs=o_spec),
            **common,
        )(x_flat, masks, weff, beff)
    else:
        kernel = functools.partial(_sepconv_kernel, width=W,
                                   mxu_dtype=mxu_dtype)
        out = pl.pallas_call(
            kernel,
            grid_spec=pltpu.PrefetchScalarGridSpec(
                num_scalar_prefetch=0, grid=grid,
                in_specs=[x_spec, m_spec,
                          pl.BlockSpec((C, 9), lambda i: (0, 0)),
                          pl.BlockSpec((C, 1), lambda i: (0, 0)),
                          pl.BlockSpec((Co, C), lambda i: (0, 0)),
                          pl.BlockSpec((Co, 1), lambda i: (0, 0))],
                out_specs=o_spec),
            **common,
        )(x_flat, masks, dw.reshape(C, 9), db.reshape(C, 1),
          pw, pb.reshape(Co, 1))

    if HWp != HW:
        out = out[:, :, :HW]
    return out.reshape(B, Co, H, W)


def _reference(x, dw, db, pw, pb):
    C = x.shape[1]
    Co = pw.shape[0]
    d = jax.lax.conv_general_dilated(
        x, dw.reshape(C, 1, 3, 3), window_strides=(1, 1),
        padding=[(1, 1), (1, 1)],
        dimension_numbers=("NCHW", "OIHW", "NCHW"),
        feature_group_count=C) + db.reshape(1, C, 1, 1)
    return jax.lax.conv_general_dilated(
        d, pw.reshape(Co, C, 1, 1), window_strides=(1, 1), padding="VALID",
        dimension_numbers=("NCHW", "OIHW", "NCHW")) + pb.reshape(1, Co, 1, 1)


if __name__ == "__main__":
    key = jax.random.PRNGKey(0)
    k1, k2, k3, k4, k5 = jax.random.split(key, 5)

    B, C, Co, H, W = 2, 4, 8, 16, 16
    x = jax.random.normal(k1, (B, C, H, W), dtype=jnp.float32)
    # Parameter shapes match the module's nn.Conv2d parameters:
    #   depth.weight (C,1,3,3) -> (C,3,3); depth.bias (C,)
    #   point.weight (Co,C,1,1) -> (Co,C);  point.bias (Co,)
    dw = jax.random.normal(k2, (C, 3, 3), dtype=jnp.float32) * 0.1
    db = jax.random.normal(k3, (C,), dtype=jnp.float32) * 0.1
    pw = jax.random.normal(k4, (Co, C), dtype=jnp.float32) * 0.1
    pb = jax.random.normal(k5, (Co,), dtype=jnp.float32) * 0.1
    ref = _reference(x, dw, db, pw, pb)

    # Default (VPU-taps + pointwise MXU) path.
    out = jax.block_until_ready(separable_conv2d(x, dw, db, pw, pb))
    assert out.shape == (B, Co, H, W)
    assert jnp.allclose(out, ref, atol=1e-4, rtol=1e-4), "VPU-tap path mismatch"

    # Factorized single-MXU-matmul path (auto-enabled for larger C).
    out_f = jax.block_until_ready(
        separable_conv2d(x, dw, db, pw, pb, factorized=True))
    assert jnp.allclose(out_f, ref, atol=1e-4, rtol=1e-4), "factorized mismatch"

    # STNet's real spatial grid is 9x9 (H*W = 81): exercises the lane-padding.
    x9 = jax.random.normal(k1, (B, C, 9, 9), dtype=jnp.float32)
    ref9 = _reference(x9, dw, db, pw, pb)
    out9 = jax.block_until_ready(separable_conv2d(x9, dw, db, pw, pb))
    assert jnp.allclose(out9, ref9, atol=1e-4, rtol=1e-4), "padded-lane mismatch"

    print("KERNEL_OK")
</pallas_src>

<mosaic_0001>
module attributes {stable_mosaic.version = 11 : i64} {
  func.func @_sepconv_kernel(%arg0: i32, %arg1: memref<1x4x256xf32, #tpu.memory_space<vmem>>, %arg2: memref<9x256xf32, #tpu.memory_space<vmem>>, %arg3: memref<4x9xf32, #tpu.memory_space<vmem>>, %arg4: memref<4x1xf32, #tpu.memory_space<vmem>>, %arg5: memref<8x4xf32, #tpu.memory_space<vmem>>, %arg6: memref<8x1xf32, #tpu.memory_space<vmem>>, %arg7: memref<1x8x256xf32, #tpu.memory_space<vmem>>) attributes {dimension_semantics = [#tpu.dimension_semantics<parallel>], iteration_bounds = array<i64: 2>, scalar_prefetch = 0 : i64, scratch_operands = 0 : i64, tpu.core_type = #tpu.core_type<tc>, window_params = [{transform_indices = @transform_0, window_bounds = array<i64: 1, 4, 256>}, {pipeline_mode = #tpu.pipeline_mode<synchronous>, transform_indices = @transform_1, window_bounds = array<i64: 9, 256>}, {pipeline_mode = #tpu.pipeline_mode<synchronous>, transform_indices = @transform_2, window_bounds = array<i64: 4, 9>}, {pipeline_mode = #tpu.pipeline_mode<synchronous>, transform_indices = @transform_3, window_bounds = array<i64: 4, 1>}, {pipeline_mode = #tpu.pipeline_mode<synchronous>, transform_indices = @transform_4, window_bounds = array<i64: 8, 4>}, {pipeline_mode = #tpu.pipeline_mode<synchronous>, transform_indices = @transform_5, window_bounds = array<i64: 8, 1>}, {transform_indices = @transform_6, window_bounds = array<i64: 1, 8, 256>}]} {
    %c0 = arith.constant 0 : index
    %c0_0 = arith.constant 0 : index
    %0 = vector.load %arg2[%c0, %c0_0] : memref<9x256xf32, #tpu.memory_space<vmem>>, vector<9x256xf32>
    %c0_1 = arith.constant 0 : index
    %c0_2 = arith.constant 0 : index
    %1 = vector.load %arg3[%c0_1, %c0_2] : memref<4x9xf32, #tpu.memory_space<vmem>>, vector<4x9xf32>
    %c0_3 = arith.constant 0 : index
    %c0_4 = arith.constant 0 : index
    %2 = vector.load %arg4[%c0_3, %c0_4] : memref<4x1xf32, #tpu.memory_space<vmem>>, vector<4x1xf32>
    %c0_5 = arith.constant 0 : index
    %c0_6 = arith.constant 0 : index
    %3 = vector.load %arg5[%c0_5, %c0_6] : memref<8x4xf32, #tpu.memory_space<vmem>>, vector<8x4xf32>
    %c0_7 = arith.constant 0 : index
    %c0_8 = arith.constant 0 : index
    %4 = vector.load %arg6[%c0_7, %c0_8] : memref<8x1xf32, #tpu.memory_space<vmem>>, vector<8x1xf32>
    %5 = vector.extract_strided_slice %1 {offsets = [0, 0], sizes = [4, 1], strides = [1, 1]} : vector<4x9xf32> to vector<4x1xf32>
    %6 = vector.extract_strided_slice %1 {offsets = [0, 1], sizes = [4, 1], strides = [1, 1]} : vector<4x9xf32> to vector<4x1xf32>
    %7 = vector.extract_strided_slice %1 {offsets = [0, 2], sizes = [4, 1], strides = [1, 1]} : vector<4x9xf32> to vector<4x1xf32>
    %8 = vector.extract_strided_slice %1 {offsets = [0, 3], sizes = [4, 1], strides = [1, 1]} : vector<4x9xf32> to vector<4x1xf32>
    %9 = vector.extract_strided_slice %1 {offsets = [0, 4], sizes = [4, 1], strides = [1, 1]} : vector<4x9xf32> to vector<4x1xf32>
    %10 = vector.extract_strided_slice %1 {offsets = [0, 5], sizes = [4, 1], strides = [1, 1]} : vector<4x9xf32> to vector<4x1xf32>
    %11 = vector.extract_strided_slice %1 {offsets = [0, 6], sizes = [4, 1], strides = [1, 1]} : vector<4x9xf32> to vector<4x1xf32>
    %12 = vector.extract_strided_slice %1 {offsets = [0, 7], sizes = [4, 1], strides = [1, 1]} : vector<4x9xf32> to vector<4x1xf32>
    %13 = vector.extract_strided_slice %1 {offsets = [0, 8], sizes = [4, 1], strides = [1, 1]} : vector<4x9xf32> to vector<4x1xf32>
    %c0_9 = arith.constant 0 : index
    %c0_10 = arith.constant 0 : index
    %c0_11 = arith.constant 0 : index
    %14 = vector.load %arg1[%c0_9, %c0_10, %c0_11] : memref<1x4x256xf32, #tpu.memory_space<vmem>>, vector<1x4x256xf32>
    %15 = vector.shape_cast %14 : vector<1x4x256xf32> to vector<4x256xf32>
    %c17_i32 = arith.constant 17 : i32
    %16 = tpu.dynamic_rotate %15 by %c17_i32 dim 1 : vector<4x256xf32>, i32 -> vector<4x256xf32>
    %17 = vector.extract_strided_slice %0 {offsets = [0, 0], sizes = [1, 256], strides = [1, 1]} : vector<9x256xf32> to vector<1x256xf32>
    %18 = vector.broadcast %17 : vector<1x256xf32> to vector<4x256xf32>
    %19 = arith.mulf %16, %18 : vector<4x256xf32>
    %c16_i32 = arith.constant 16 : i32
    %20 = tpu.dynamic_rotate %15 by %c16_i32 dim 1 : vector<4x256xf32>, i32 -> vector<4x256xf32>
    %21 = vector.extract_strided_slice %0 {offsets = [1, 0], sizes = [1, 256], strides = [1, 1]} : vector<9x256xf32> to vector<1x256xf32>
    %22 = vector.broadcast %21 : vector<1x256xf32> to vector<4x256xf32>
    %23 = arith.mulf %20, %22 : vector<4x256xf32>
    %c15_i32 = arith.constant 15 : i32
    %24 = tpu.dynamic_rotate %15 by %c15_i32 dim 1 : vector<4x256xf32>, i32 -> vector<4x256xf32>
    %25 = vector.extract_strided_slice %0 {offsets = [2, 0], sizes = [1, 256], strides = [1, 1]} : vector<9x256xf32> to vector<1x256xf32>
    %26 = vector.broadcast %25 : vector<1x256xf32> to vector<4x256xf32>
    %27 = arith.mulf %24, %26 : vector<4x256xf32>
    %c1_i32 = arith.constant 1 : i32
    %28 = tpu.dynamic_rotate %15 by %c1_i32 dim 1 : vector<4x256xf32>, i32 -> vector<4x256xf32>
    %29 = vector.extract_strided_slice %0 {offsets = [3, 0], sizes = [1, 256], strides = [1, 1]} : vector<9x256xf32> to vector<1x256xf32>
    %30 = vector.broadcast %29 : vector<1x256xf32> to vector<4x256xf32>
    %31 = arith.mulf %28, %30 : vector<4x256xf32>
    %c255_i32 = arith.constant 255 : i32
    %32 = tpu.dynamic_rotate %15 by %c255_i32 dim 1 : vector<4x256xf32>, i32 -> vector<4x256xf32>
    %33 = vector.extract_strided_slice %0 {offsets = [5, 0], sizes = [1, 256], strides = [1, 1]} : vector<9x256xf32> to vector<1x256xf32>
    %34 = vector.broadcast %33 : vector<1x256xf32> to vector<4x256xf32>
    %35 = arith.mulf %32, %34 : vector<4x256xf32>
    %c241_i32 = arith.constant 241 : i32
    %36 = tpu.dynamic_rotate %15 by %c241_i32 dim 1 : vector<4x256xf32>, i32 -> vector<4x256xf32>
    %37 = vector.extract_strided_slice %0 {offsets = [6, 0], sizes = [1, 256], strides = [1, 1]} : vector<9x256xf32> to vector<1x256xf32>
    %38 = vector.broadcast %37 : vector<1x256xf32> to vector<4x256xf32>
    %39 = arith.mulf %36, %38 : vector<4x256xf32>
    %c240_i32 = arith.constant 240 : i32
    %40 = tpu.dynamic_rotate %15 by %c240_i32 dim 1 : vector<4x256xf32>, i32 -> vector<4x256xf32>
    %41 = vector.extract_strided_slice %0 {offsets = [7, 0], sizes = [1, 256], strides = [1, 1]} : vector<9x256xf32> to vector<1x256xf32>
    %42 = vector.broadcast %41 : vector<1x256xf32> to vector<4x256xf32>
    %43 = arith.mulf %40, %42 : vector<4x256xf32>
    %c239_i32 = arith.constant 239 : i32
    %44 = tpu.dynamic_rotate %15 by %c239_i32 dim 1 : vector<4x256xf32>, i32 -> vector<4x256xf32>
    %45 = vector.extract_strided_slice %0 {offsets = [8, 0], sizes = [1, 256], strides = [1, 1]} : vector<9x256xf32> to vector<1x256xf32>
    %46 = vector.broadcast %45 : vector<1x256xf32> to vector<4x256xf32>
    %47 = arith.mulf %44, %46 : vector<4x256xf32>
    %48 = vector.broadcast %5 : vector<4x1xf32> to vector<4x256xf32>
    %49 = arith.mulf %19, %48 : vector<4x256xf32>
    %50 = vector.broadcast %6 : vector<4x1xf32> to vector<4x256xf32>
    %51 = arith.mulf %23, %50 : vector<4x256xf32>
    %52 = arith.addf %49, %51 : vector<4x256xf32>
    %53 = vector.broadcast %7 : vector<4x1xf32> to vector<4x256xf32>
    %54 = arith.mulf %27, %53 : vector<4x256xf32>
    %55 = arith.addf %52, %54 : vector<4x256xf32>
    %56 = vector.broadcast %8 : vector<4x1xf32> to vector<4x256xf32>
    %57 = arith.mulf %31, %56 : vector<4x256xf32>
    %58 = vector.broadcast %9 : vector<4x1xf32> to vector<4x256xf32>
    %59 = arith.mulf %15, %58 : vector<4x256xf32>
    %60 = arith.addf %57, %59 : vector<4x256xf32>
    %61 = vector.broadcast %10 : vector<4x1xf32> to vector<4x256xf32>
    %62 = arith.mulf %35, %61 : vector<4x256xf32>
    %63 = arith.addf %60, %62 : vector<4x256xf32>
    %64 = vector.broadcast %11 : vector<4x1xf32> to vector<4x256xf32>
    %65 = arith.mulf %39, %64 : vector<4x256xf32>
    %66 = vector.broadcast %12 : vector<4x1xf32> to vector<4x256xf32>
    %67 = arith.mulf %43, %66 : vector<4x256xf32>
    %68 = arith.addf %65, %67 : vector<4x256xf32>
    %69 = vector.broadcast %13 : vector<4x1xf32> to vector<4x256xf32>
    %70 = arith.mulf %47, %69 : vector<4x256xf32>
    %71 = arith.addf %68, %70 : vector<4x256xf32>
    %72 = arith.addf %55, %63 : vector<4x256xf32>
    %73 = vector.broadcast %2 : vector<4x1xf32> to vector<4x256xf32>
    %74 = arith.addf %71, %73 : vector<4x256xf32>
    %75 = arith.addf %72, %74 : vector<4x256xf32>
    %cst = arith.constant dense<0.000000e+00> : vector<8x256xf32>
    %76 = tpu.matmul %3, %75, %cst {dimension_numbers = #tpu.dot_dimension_numbers<[1], [0], [0], [1], [0, 0, 1, 1], [], []>} : vector<8x4xf32>, vector<4x256xf32>, vector<8x256xf32> -> vector<8x256xf32>
    %77 = vector.broadcast %4 : vector<8x1xf32> to vector<8x256xf32>
    %78 = arith.addf %76, %77 : vector<8x256xf32>
    %c0_12 = arith.constant 0 : index
    %c0_13 = arith.constant 0 : index
    %c0_14 = arith.constant 0 : index
    %79 = vector.load %arg7[%c0_12, %c0_13, %c0_14] : memref<1x8x256xf32, #tpu.memory_space<vmem>>, vector<1x8x256xf32>
    %80 = vector.shape_cast %79 : vector<1x8x256xf32> to vector<8x256xf32>
    %81 = vector.shape_cast %78 : vector<8x256xf32> to vector<1x8x256xf32>
    tpu.vector_store %arg7[%c0_12, %c0_13, %c0_14], %81 {strides = array<i32>} : memref<1x8x256xf32, #tpu.memory_space<vmem>>, vector<1x8x256xf32>,
    return
  }
  func.func @transform_0(%arg0: i32) -> (i32, i32, i32) {
    %c0_i32 = arith.constant 0 : i32
    %c0_i32_0 = arith.constant 0 : i32
    %c0_i32_1 = arith.constant 0 : i32
    return %arg0, %c0_i32, %c0_i32_0 : i32, i32, i32
  }
  func.func @transform_1(%arg0: i32) -> (i32, i32) {
    %c0_i32 = arith.constant 0 : i32
    %c0_i32_0 = arith.constant 0 : i32
    %c0_i32_1 = arith.constant 0 : i32
    return %c0_i32, %c0_i32_0 : i32, i32
  }
  func.func @transform_2(%arg0: i32) -> (i32, i32) {
    %c0_i32 = arith.constant 0 : i32
    %c0_i32_0 = arith.constant 0 : i32
    %c0_i32_1 = arith.constant 0 : i32
    return %c0_i32, %c0_i32_0 : i32, i32
  }
  func.func @transform_3(%arg0: i32) -> (i32, i32) {
    %c0_i32 = arith.constant 0 : i32
    %c0_i32_0 = arith.constant 0 : i32
    %c0_i32_1 = arith.constant 0 : i32
    return %c0_i32, %c0_i32_0 : i32, i32
  }
  func.func @transform_4(%arg0: i32) -> (i32, i32) {
    %c0_i32 = arith.constant 0 : i32
    %c0_i32_0 = arith.constant 0 : i32
    %c0_i32_1 = arith.constant 0 : i32
    return %c0_i32, %c0_i32_0 : i32, i32
  }
  func.func @transform_5(%arg0: i32) -> (i32, i32) {
    %c0_i32 = arith.constant 0 : i32
    %c0_i32_0 = arith.constant 0 : i32
    %c0_i32_1 = arith.constant 0 : i32
    return %c0_i32, %c0_i32_0 : i32, i32
  }
  func.func @transform_6(%arg0: i32) -> (i32, i32, i32) {
    %c0_i32 = arith.constant 0 : i32
    %c0_i32_0 = arith.constant 0 : i32
    %c0_i32_1 = arith.constant 0 : i32
    return %arg0, %c0_i32, %c0_i32_0 : i32, i32, i32
  }
}

</mosaic_0001>

<bundles_post_ra>
// kernel: tpu_custom_call.1
= control target key start
LH: loop header
LB: loop body
LE: loop exit
PB: predicated region body
PF: predicated region fallthrough
CT: control target
= control target key end

     0   :  { %11 = vsyncpa [#allocation3], 0  ;;  %s1099_s0 = inlined_call_operand.vmem [shape: f32[2,4,256], index: 0, kind: input, shape index: {}]   ;;  %s1100_s1 = inlined_call_operand.hbm [shape: f32[9,256], index: 1, kind: input, shape index: {}]   ;;  %s1101_s2 = inlined_call_operand.vmem [shape: f32[4,9], index: 2, kind: input, shape index: {}]   ;;  %s1102_s3 = inlined_call_operand.vmem [shape: f32[4,1], index: 3, kind: input, shape index: {}]   ;;  %s1103_s4 = inlined_call_operand.vmem [shape: f32[8,4], index: 4, kind: input, shape index: {}]   ;;  %s1104_s5 = inlined_call_operand.vmem [shape: f32[8,1], index: 5, kind: input, shape index: {}]   ;;  %s1105_s6 = inlined_call_operand.hbm [shape: f32[2,8,256], index: 6, kind: output, shape index: {}]  }
   0x1   :  { %12 = vsyncpa [#allocation4], 0 }
   0x2   :  { %14 = vsyncpa [#allocation4 + $0x1], 0  ;;  %s898_s21 = smov 0   ;;  %s900_s22 = smov 0  }
   0x3   :  { %s902_s23 = smov 0   ;;  %s904_s24 = smov 0  }
   0x4 LB: > { %s919_s25 = sadd.s32 4294967295, %s840_s24   ;;  %s640_s26 = sadd.s32 4294967294, %s840_s24   ;;  %s840_s24 = sphi %s904_s24, %s1111_s24   ;;  %s836_s23 = sphi %s902_s23, %s1110_s23   ;;  %s832_s22 = sphi %s900_s22, %s1109_s22   ;;  %s828_s21 = sphi %s898_s21, %s1108_s21  }
   0x5   : > { %s923_s27 = sadd.s32 1, %s840_s24   ;;  %s158_s28 = sadd.s32 1, %s836_s23 }
   0x6   : > { %s155_s29 = ssub.s32 %s840_s24, %s923_s27  ;;  %p168_p0 = scmp.ne.s32.totalorder %s836_s23, %s832_s22 }
   0x7   : > { %p156_p1 = scmp.eq.s32.totalorder %s155_s29, 0  ;;  %p169_p2 = scmp.eq.s32.totalorder %s919_s25, 1 }
   0x8   : > { %p174_p3 = scmp.ne.s32.totalorder %s832_s22, %s828_s21  ;;  %p175_p4 = scmp.eq.s32.totalorder %s640_s26, 1 }
   0x9   : > { %s934_s30 = scalar_select %p156_p1, %s836_s23, %s158_s28  }
   0xa   : > { %p936_p5 = por %p169_p2, %p168_p0  ;;  %p940_p6 = por %p175_p4, %p174_p3 }
   0xb   : > { %p641_p7 = scmp.ge.s32.totalorder %s840_s24, 1  ;;  %p182_p8 = scmp.lt.s32.totalorder %s840_s24, 3 }
   0xc   : > { %p674_p9 = scmp.eq.s32.totalorder %s919_s25, 0  ;;  %s193_s11 = sshll.u32 %s1100_s1, 4  ;;  %s194_s11 = int_to_ptr.hbm [resolvable:$true] %s193_s11 }
   0xd   : > { %p183_p10 = pnand %p641_p7, %p182_p8  ;;  %s842_s12 = smov [#allocation2]  }
   0xe   : > { %s195_s13 = sshll.u32 %s842_s12, 4  ;;  %s843_s14 = smov 256   ;;  %s196_s13 = int_to_ptr.vmem [resolvable:$true] %s195_s13 }
   0xf   : > { %p666_p11 = pneg %p183_p10  ;;  %s844_s15 = smov 16  }
  0x10   : > { %231 = sbr.rel (%p183_p10) target bundleno = 357 (0x165), region = 44 }
  0x11   : > { %p667_p12 = pnand %p674_p9, %p666_p11 }
  0x13   : > { %669 = dma.hbm_to_vmem [thread:$0]  (!%p667_p12), %s194_s11, 512, %s196_s13, [#allocation3], %s843_s14, %s843_s14, %s844_s15  }
  0x15   : > { %819 = dma.done.wait (%p674_p9), [#allocation3], 512  }
  0x16   : > { %821 = vsyncadd (%p674_p9), [#allocation3], 4294966784  ;;  %v845_v0 = vmov 4   ;;  %v846_v1 = vmov 3   ;;  %p262_p13 = scmp.lt.s32.totalorder %s919_s25, 1  ;;  %v847_v2 = vmov 0   ;;  %v286_v47 = vlaneseq }
  0x17   : > { %730 = vset.pattern.permute.xlu0 %v845_v0  ;;  %733 = vset.pattern.permute.xlu1 %v846_v1  ;;  %v965_v3 = vld [vmem:[%s1101_s2] sm:$0xf]  ;;  %v848_v7 = vmov 7   ;;  %v849_v8 = vmov 6   ;;  %s850_s29 = smov 17   ;;  %v851_v9 = vmov 1  }
  0x18   : > { %731 = vset.pattern.permute.xlu2 %v847_v2  ;;  %s263_s16 = scalar_select %p262_p13, %s919_s25, 1  ;;  %431 = vperm.xlu1 %733, %v965_v3   ;;  %v854_v14 = vmov 2   ;;  %v856_v17 = vmov 8   ;;  %v857_v18 = vmov 5   ;;  %v272_v27 = vld [vmem:[%s1102_s3] sm:$0xf] }
  0x19   : > { %409 = vperm.xlu2 %731, %v965_v3   ;;  %437 = vperm.xlu0 %730, %v965_v3   ;;  %s852_s9 = smov 16   ;;  %s853_s10 = smov 15   ;;  %v862_v28 = vmov 839922192   ;;  %v1007_v51 = vand.u32 127, %v286_v47  ;;  %v274_v52 = vld [vmem:[%s1104_s5] sm:$0xff] }
  0x1a   : > { %s658_s17 = sshll.u32 %s263_s16, 3  ;;  %s855_s11 = smov 1   ;;  %v440_v29 = vunpack.c.l.s4 %v862_v28  ;;  %v1012_v53 = vld [vmem:[#allocation2] sm:$0xff]  ;;  %v1014_v54 = vld [vmem:[#allocation2 + $0x8] sm:$0xff]  ;;  %v742_v47 = vld [vmem:[#allocation2 + $0x10] ss:$0 sm:$0xff] }
  0x1b   : > { %s266_s20 = scalar_lea.vmem %s1099_s0, %s658_s17  ;;  %s858_s12 = smov 127   ;;  %vm288_vm0 = vcmp.lt.s32.totalorder %v1007_v51, 17  ;;  %v291_v55 = vperm.slane %v1012_v53, 0  ;;  %v292_v56 = vperm.slane %v1014_v54, 0  ;;  %vm320_vm1 = vcmp.lt.s32.totalorder %v1007_v51, 15 }
  0x1c   : > { %v967_v4 = vld [vmem:[%s266_s20] sm:$0xff]  ;;  %s859_s13 = smov 113   ;;  %s860_s14 = smov 112   ;;  %v441_v31 = vunpack.c.0.s8 %v440_v29  ;;  %v323_v57 = vperm.slane %v1012_v53, 2  ;;  %vm304_vm2 = vcmp.lt.s32.totalorder %v1007_v51, 16  ;;  %v324_v61 = vperm.slane %v1014_v54, 2 }
  0x1d   : > { %277 = vst [vmem:[#allocation1] ss:$2 sm:$0xff] %v967_v4  ;;  %s861_s15 = smov 111   ;;  %v307_v62 = vperm.slane %v1012_v53, 1  ;;  %v308_v1 = vperm.slane %v1014_v54, 1  ;;  %vm336_vm3 = vcmp.lt.s32.totalorder %v1007_v51, 1 }
  0x1e   : > { %vm352_vm4 = vcmp.lt.s32.totalorder %v1007_v51, 127  ;;  %vm384_vm5 = vcmp.lt.s32.totalorder %v1007_v51, 112  ;;  %vm368_vm6 = vcmp.lt.s32.totalorder %v1007_v51, 113  ;;  %vm400_vm7 = vcmp.lt.s32.totalorder %v1007_v51, 111  ;;  %s259_s28 = sand.u32 1, %s832_s22   ;;  %s794_s20 = scalar_lea.hbm %s1105_s6, 32 }
  0x1f   : > { %vm503_vm8 = vcmask 1043456   ;;  %vm499_vm9 = vcmask 31744   ;;  %s553_s16 = scalar_lea.sflag [#allocation4], %s259_s28 }
  0x20   : > { %735 = vset.pattern.permute.xlu1 %v848_v7 }
  0x21   : > { %734 = vset.pattern.permute.xlu2 %v849_v8  ;;  %468 = vperm.xlu1 %735, %v965_v3   ;;  %v355_v8 = vperm.slane %v1012_v53, 5 }
  0x22   : > { %462 = vperm.xlu2 %734, %v965_v3   ;;  %732 = vset.pattern.permute.xlu0 %v851_v9 }
  0x24   : > { %v278_v5 = vld.sshfl [vmem:[#allocation1] sm:$0xff pattern:$0x75316420]  ;;  %v279_v6 = vld.sshfl [vmem:[#allocation1 + $0x8] sm:$0xff pattern:$0x75316420] }
  0x25   : > { %295 = vst [vmem:[#allocation1] ss:$2 sm:$0xff] %v967_v4  ;;  %282 = vrot.lane.b32.xlu0 %v278_v5, %s850_s29 }
  0x29   : > { %284 = vrot.lane.b32.xlu1 %v279_v6, %s850_s29  ;;  %s646_s29 = sshll.u32 %s259_s28, 4 }
  0x2a   : > { %736 = vset.pattern.permute.xlu2 %v854_v14  ;;  %738 = vset.pattern.permute.xlu1 %v856_v17 }
  0x2c   : > { %v296_v10 = vld.sshfl [vmem:[#allocation1] sm:$0xff pattern:$0x75316420]  ;;  %v297_v11 = vld.sshfl [vmem:[#allocation1 + $0x8] sm:$0xff pattern:$0x75316420] }
  0x2d   : > { %311 = vst [vmem:[#allocation1] ss:$2 sm:$0xff] %v967_v4  ;;  %415 = vperm.xlu0 %732, %v965_v3   ;;  %302 = vrot.lane.b32.xlu2 %v297_v11, %s852_s9  ;;  %v387_v11 = vperm.slane %v1012_v53, 7 }
  0x31   : > { %300 = vrot.lane.b32.xlu1 %v296_v10, %s852_s9  ;;  %s659_s9 = sshll.u32 %s919_s25, 4 }
  0x34   : > { %v313_v12 = vld.sshfl [vmem:[#allocation1 + $0x8] sm:$0xff pattern:$0x75316420]  ;;  %v312_v13 = vld.sshfl [vmem:[#allocation1] sm:$0xff pattern:$0x75316420] }
  0x35   : > { %327 = vst [vmem:[#allocation1] ss:$2 sm:$0xff] %v967_v4  ;;  %318 = vrot.lane.b32.xlu0 %v313_v12, %s853_s10  ;;  %316 = vrot.lane.b32.xlu2 %v312_v13, %s853_s10  ;;  %v388_v12 = vperm.slane %v1014_v54, 7 }
  0x36   : > { %737 = vset.pattern.permute.xlu0 %v857_v18 }
  0x3c   : > { %v329_v15 = vld.sshfl [vmem:[#allocation1 + $0x8] sm:$0xff pattern:$0x75316420]  ;;  %v328_v16 = vld.sshfl [vmem:[#allocation1] sm:$0xff pattern:$0x75316420] }
  0x3d   : > { %343 = vst [vmem:[#allocation1] ss:$2 sm:$0xff] %v967_v4  ;;  %334 = vrot.lane.b32.xlu0 %v329_v15, %s855_s11  ;;  %332 = vrot.lane.b32.xlu2 %v328_v16, %s855_s11 }
  0x44   : > { %v344_v19 = vld.sshfl [vmem:[#allocation1] sm:$0xff pattern:$0x75316420]  ;;  %v345_v20 = vld.sshfl [vmem:[#allocation1 + $0x8] sm:$0xff pattern:$0x75316420] }
  0x45   : > { %348 = vrot.lane.b32.xlu1 %v344_v19, %s858_s12  ;;  %359 = vst [vmem:[#allocation1] ss:$2 sm:$0xff] %v967_v4  ;;  %350 = vrot.lane.b32.xlu2 %v345_v20, %s858_s12  ;;  %v371_v19 = vperm.slane %v1012_v53, 6  ;;  %v372_v20 = vperm.slane %v1014_v54, 6  ;;  %s564_s12 = scalar_lea.hbm %s1105_s6, %s659_s9 }
  0x4c   : > { %v360_v21 = vld.sshfl [vmem:[#allocation1] sm:$0xff pattern:$0x75316420]  ;;  %v361_v22 = vld.sshfl [vmem:[#allocation1 + $0x8] sm:$0xff pattern:$0x75316420] }
  0x4d   : > { %364 = vrot.lane.b32.xlu1 %v360_v21, %s859_s13  ;;  %375 = vst [vmem:[#allocation1] ss:$2 sm:$0xff] %v967_v4  ;;  %366 = vrot.lane.b32.xlu2 %v361_v22, %s859_s13  ;;  %s261_s13 = scalar_lea.vmem [#allocation5], %s646_s29 }
  0x54   : > { %v377_v23 = vld.sshfl [vmem:[#allocation1 + $0x8] sm:$0xff pattern:$0x75316420]  ;;  %v376_v24 = vld.sshfl [vmem:[#allocation1] sm:$0xff pattern:$0x75316420] }
  0x55   : > { %382 = vrot.lane.b32.xlu1 %v377_v23, %s860_s14  ;;  %380 = vrot.lane.b32.xlu0 %v376_v24, %s860_s14  ;;  %391 = vst [vmem:[#allocation1] ss:$2 sm:$0xff] %v967_v4  ;;  %s566_s14 = sshll.u32 %s261_s13, 4  ;;  %s567_s14 = int_to_ptr.vmem [resolvable:$true] %s566_s14 }
  0x56   : > { %423 = vperm.xlu2 %736, %v965_v3  }
  0x5c   : > { %v393_v25 = vld.sshfl [vmem:[#allocation1 + $0x8] sm:$0xff pattern:$0x75316420]  ;;  %v392_v26 = vld.sshfl [vmem:[#allocation1] sm:$0xff pattern:$0x75316420] }
  0x5d   : > { %398 = vrot.lane.b32.xlu1 %v393_v25, %s861_s15  ;;  %396 = vrot.lane.b32.xlu0 %v392_v26, %s861_s15  ;;  %s568_s15 = sshll.u32 %s564_s12, 4  ;;  %s569_s15 = int_to_ptr.hbm [resolvable:$true] %s568_s15 }
  0x5e   : > { %739 = vset.pattern.permute.xlu2 %v847_v2  ;;  %s788_s17 = sshra.s32 %s569_s15, 4  ;;  %s789_s17 = int_to_ptr.hbm [resolvable:$true] %s788_s17 }
  0x5f   : > { %487 = vperm.xlu2 %739, %v272_v27   ;;  %s790_s25 = scalar_lea.hbm %s789_s17, 16  ;;  %p795_p3 = scmp.lt.s32.totalorder %s789_s17, %s1105_s6 }
  0x60   : > { %p791_p0 = scmp.ne.s32.totalorder %s789_s17, %s790_s25  ;;  %p796_p4 = scmp.lt.s32.totalorder %s794_s20, %s790_s25 }
  0x62   : > { %p792_p1 = pnand %p791_p0, %p936_p5  ;;  %p797_p7 = por %p796_p4, %p795_p3 }
  0x64   : > { %p793_p2 = pneg %p792_p1 }
  0x65   : > { %476 = vperm.xlu1 %738, %v965_v3   ;;  %454 = vperm.xlu0 %737, %v965_v3   ;;  %v340_v3 = vperm.slane %v1014_v54, 3 }
  0x66   : > { %p798_p8 = pnand %p797_p7, %p793_p2 }
  0x6d   : > { %740 = vset.pattern.permute.xlu1 %v847_v2  ;;  %741 = vset.pattern.permute.xlu0 %v847_v2  ;;  %v339_v2 = vperm.slane %v1012_v53, 3 }
  0x6e   : > { %496 = vperm.xlu1 %740, %v274_v52  }
  0x73   : > { %v992_v30 = vpop.permute.xlu2 %409 }
  0x7c   : > { %v997_v36 = vpop.permute.xlu2 %462 }
  0x87   : > { %v303_v38 = vpop.permute.xlu2 %302 }
  0x8a   : > { %v994_v34 = vpop.permute.xlu1 %431 }
  0x8b   : > { %v438_v32 = vpop.permute.xlu0 %437 }
  0x8c   : > { %v442_v33 = vperm.slane %v438_v32, %v441_v31  ;;  %v356_v31 = vperm.slane %v1014_v54, 5 }
  0x8e   : > { %v444_v35 = vmul.f32 %v442_v33, %v967_v4 }
  0x8f   : > { %v317_v41 = vpop.permute.xlu2 %316 }
  0x90   : > { %446 = vst [vmem:[#allocation1] ss:$2 sm:$0xff] %v444_v35 }
  0x93   : > { %v999_v37 = vpop.permute.xlu1 %468 }
  0x97   : > { %v283_v39 = vpop.permute.xlu0 %282  ;;  %v333_v44 = vpop.permute.xlu2 %332  ;;  %v447_v51 = vld.sshfl [vmem:[#allocation1] sm:$0xff pattern:$0x75316420] }
  0x9b   : > { %v285_v40 = vpop.permute.xlu1 %284 }
  0x9c   : > { %v289_v59 = vsel %vm288_vm0, %v283_v39, %v285_v40  ;;  %v290_v60 = vsel %vm288_vm0, %v285_v40, %v283_v39 }
  0x9d   : > { %v293_v6 = vmul.f32 %v291_v55, %v290_v60  ;;  %v294_v7 = vmul.f32 %v292_v56, %v289_v59 }
  0x9f   : > { %v1001_v42 = vpop.permute.xlu0 %415  ;;  %v1005_v48 = vpop.permute.xlu2 %350  ;;  %v412_v25 = vmul.f32 %v992_v30, %v293_v6  ;;  %v413_v32 = vmul.f32 %v992_v30, %v294_v7 }
  0xa3   : > { %v301_v43 = vpop.permute.xlu1 %300 }
  0xa4   : > { %v305_v4 = vsel %vm304_vm2, %v301_v43, %v303_v38  ;;  %v306_v5 = vsel %vm304_vm2, %v303_v38, %v301_v43 }
  0xa5   : > { %v309_v13 = vmul.f32 %v307_v62, %v306_v5  ;;  %v310_v14 = vmul.f32 %v308_v1, %v305_v4 }
  0xa7   : > { %v319_v45 = vpop.permute.xlu0 %318  ;;  %v367_v58 = vpop.permute.xlu2 %366  ;;  %v418_v33 = vmul.f32 %v1001_v42, %v309_v13  ;;  %v419_v35 = vmul.f32 %v1001_v42, %v310_v14 }
  0xa8   : > { %v321_v17 = vsel %vm320_vm1, %v317_v41, %v319_v45  ;;  %v322_v18 = vsel %vm320_vm1, %v319_v45, %v317_v41 }
  0xa9   : > { %v325_v38 = vmul.f32 %v323_v57, %v322_v18  ;;  %v326_v39 = vmul.f32 %v324_v61, %v321_v17  ;;  %v420_v55 = vadd.f32 %v418_v33, %v412_v25 }
  0xaf   : > { %v335_v49 = vpop.permute.xlu0 %334 }
  0xb0   : > { %v337_v9 = vsel %vm336_vm3, %v333_v44, %v335_v49  ;;  %v338_v10 = vsel %vm336_vm3, %v335_v49, %v333_v44  ;;  %v424_v40 = vpop.permute.xlu2 %423  ;;  %v743_v49 = vld [vmem:[#allocation2 + $0x18] ss:$0 sm:$0xff] }
  0xb1   : > { %v341_v21 = vmul.f32 %v339_v2, %v338_v10  ;;  %v342_v22 = vmul.f32 %v340_v3, %v337_v9  ;;  %v426_v56 = vmul.f32 %v424_v40, %v325_v38  ;;  %v427_v57 = vmul.f32 %v424_v40, %v326_v39 }
  0xb3   : > { %v434_v44 = vmul.f32 %v994_v34, %v341_v21  ;;  %v435_v45 = vmul.f32 %v994_v34, %v342_v22  ;;  %v421_v34 = vadd.f32 %v419_v35, %v413_v32  ;;  %v428_v9 = vadd.f32 %v426_v56, %v420_v55 }
  0xb5   : > { %v451_v1 = vadd.f32 %v447_v51, %v434_v44  ;;  %v429_v10 = vadd.f32 %v427_v57, %v421_v34 }
  0xb7   : > { %v1003_v46 = vpop.permute.xlu1 %348 }
  0xb8   : > { %v353_v30 = vsel %vm352_vm4, %v1003_v46, %v1005_v48  ;;  %v354_v42 = vsel %vm352_vm4, %v1005_v48, %v1003_v46  ;;  %v448_v46 = vld.sshfl [vmem:[#allocation1 + $0x8] sm:$0xff pattern:$0x75316420] }
  0xb9   : > { %v357_v48 = vmul.f32 %v355_v8, %v353_v30  ;;  %v358_v62 = vmul.f32 %v356_v31, %v354_v42 }
  0xbf   : > { %v365_v50 = vpop.permute.xlu1 %364 }
  0xc0   : > { %v369_v23 = vsel %vm368_vm6, %v365_v50, %v367_v58  ;;  %v370_v24 = vsel %vm368_vm6, %v367_v58, %v365_v50 }
  0xc1   : > { %v373_v41 = vmul.f32 %v371_v19, %v369_v23  ;;  %v374_v43 = vmul.f32 %v372_v20, %v370_v24  ;;  %v273_v20 = vld [vmem:[%s1103_s4] sm:$0xff] }
  0xc3   : > { %v465_v58 = vmul.f32 %v997_v36, %v373_v41  ;;  %v466_v59 = vmul.f32 %v997_v36, %v374_v43 }
  0xc7   : > { %v383_v63 = vpop.permute.xlu1 %382  ;;  %v381_v0 = vpop.permute.xlu0 %380 }
  0xc8   : > { %v385_v15 = vsel %vm384_vm5, %v381_v0, %v383_v63  ;;  %v386_v16 = vsel %vm384_vm5, %v383_v63, %v381_v0 }
  0xc9   : > { %v389_v26 = vmul.f32 %v387_v11, %v385_v15  ;;  %v390_v27 = vmul.f32 %v388_v12, %v386_v16  ;;  %v488_v11 = vpop.permute.xlu2 %487 }
  0xcb   : > { %v471_v50 = vmul.f32 %v999_v37, %v389_v26  ;;  %v472_v52 = vmul.f32 %v999_v37, %v390_v27  ;;  %v452_v37 = vadd.f32 %v448_v46, %v435_v45 }
  0xcd   : > { %v473_v2 = vadd.f32 %v471_v50, %v465_v58  ;;  %v474_v3 = vadd.f32 %v472_v52, %v466_v59 }
  0xcf   : > { %v399_v28 = vpop.permute.xlu1 %398  ;;  %v397_v29 = vpop.permute.xlu0 %396 }
  0xd0   : > { %v401_v53 = vsel %vm400_vm7, %v397_v29, %v399_v28  ;;  %v402_v54 = vsel %vm400_vm7, %v399_v28, %v397_v29 }
  0xd1   : > { %v405_v60 = vmul.f32 %v742_v47, %v401_v53  ;;  %v406_v61 = vmul.f32 %v743_v49, %v402_v54 }
  0xd7   : > { %v477_v63 = vpop.permute.xlu1 %476  ;;  %v455_v0 = vpop.permute.xlu0 %454 }
  0xd8   : > { %v479_v4 = vmul.f32 %v477_v63, %v405_v60  ;;  %v480_v5 = vmul.f32 %v477_v63, %v406_v61  ;;  %v457_v6 = vmul.f32 %v455_v0, %v357_v48  ;;  %v458_v7 = vmul.f32 %v455_v0, %v358_v62 }
  0xda   : > { %v459_v36 = vadd.f32 %v457_v6, %v451_v1  ;;  %v460_v12 = vadd.f32 %v458_v7, %v452_v37  ;;  %v481_v13 = vadd.f32 %v479_v4, %v473_v2  ;;  %v482_v14 = vadd.f32 %v480_v5, %v474_v3 }
  0xdc   : > { %v490_v8 = vadd.f32 %v488_v11, %v481_v13  ;;  %v491_v15 = vadd.f32 %v488_v11, %v482_v14  ;;  %v483_v16 = vadd.f32 %v459_v36, %v428_v9  ;;  %v484_v17 = vadd.f32 %v460_v12, %v429_v10 }
  0xde   : > { %v492_v18 = vadd.f32 %v490_v8, %v483_v16  ;;  %v493_v19 = vadd.f32 %v491_v15, %v484_v17 }
  0xe0   : > { %649 = vmatpush.msk.msra.mxu0 %vm503_vm8, %v492_v18  ;;  %651 = vmatpush.msk.msra.mxu1 %vm503_vm8, %v493_v19  ;;  %v497_v21 = vpop.permute.xlu1 %496 }
  0xe1   : > { %650 = vmatmul.msk.f32.vlgmr.msra.gmra.mxu0 %vm499_vm9, %v273_v20  ;;  %652 = vmatmul.msk.f32.vlgmr.msra.gmra.mxu1 %vm499_vm9, %v273_v20 }
 0x15e   : > { %v527_v22 = vpop.f32.mrf.mxu0  ;;  %v547_v23 = vpop.f32.mrf.mxu1 }
 0x15f   : > { %v528_v24 = vadd.f32 %v527_v22, %v497_v21  ;;  %v548_v25 = vadd.f32 %v547_v23, %v497_v21 }
 0x161   : > { %550 = vst [vmem:[%s261_s13] sm:$0xff] %v528_v24 }
 0x162   : > { %551 = vst [vmem:[%s261_s13 + $0x8] sm:$0xff] %v548_v25 }
 0x163   : > { %801 = shalt.err (!%p798_p8)
}
 0x164   : > { %664 = dma.vmem_to_hbm [thread:$0]  (%p936_p5), %s567_s14, 256, %s569_s15, %s553_s16  }
 0x165 PF: > { %p676_p9 = scmp.ge.s32.totalorder %s840_s24, 2  ;;  %s580_s28 = sand.u32 1, %s828_s21  }
 0x166   : > { %s581_s9 = scalar_lea.sflag [#allocation4], %s580_s28 }
 0x167   : > { %p671_p10 = pnand %p676_p9, %p940_p6 }
 0x169   : > { %p672_p11 = pneg %p671_p10 }
 0x16b   : > { %823 = dma.done.wait (%p672_p11), %s581_s9, 256  }
 0x16c   : > { %825 = vsyncadd (%p672_p11), %s581_s9, 4294967040  ;;  %p17_p12 = scmp.ge.s32.totalorder %s923_s27, 4   ;;  %s1108_s21 = smov %s832_s22 }
 0x16d   : > { %s1109_s22 = smov %s836_s23  ;;  %s1110_s23 = smov %s934_s30 }
 0x16e   : > { %s1111_s24 = smov %s923_s27  ;;  %19 = sbr.rel (!%p17_p12) target bundleno = 4 (0x4), region = 84 }
 0x173   :  { %587 = vsyncpa [#allocation3], 1 }
 0x174   :  { %589 = vsyncpa [#allocation3 + $0x1], 1 }
 0x175   :  { %590 = vsyncpa [#allocation4], 1 }
 0x176   :  { %592 = vsyncpa [#allocation4 + $0x1], 1 }

</bundles_post_ra>
